<compile_context>
chip_gen: v7x
topology: tpu7x:2x2x1
jax: 0.10.0
libtpu: 0.0.40
codegen_flags: <defaults>
</compile_context>

<pallas_src>
import functools

import jax
import jax.numpy as jnp
from jax import lax
from jax.experimental import pallas as pl
from jax.experimental.pallas import tpu as pltpu


def _round_up(x, m):
    return ((x + m - 1) // m) * m


def _rloss_kernel(logits_ref, tgt_ref, out_ref, acc_loss, acc_corr):
    s = pl.program_id(2)

    @pl.when(s == 0)
    def _():
        acc_loss[...] = jnp.zeros_like(acc_loss)
        acc_corr[...] = jnp.zeros_like(acc_corr)

    C = logits_ref.shape[0]
    tgt = tgt_ref[...]                                   # (TR, 128) int32, -1 = pad
    msk = (tgt >= 0).astype(jnp.float32)                 # replaces the mask stream

    # Statically unrolled class axis: each class is a dense (TR, 128) slab.
    rows = [logits_ref[c].astype(jnp.float32) for c in range(C)]

    # Fused running max + first-occurrence argmax (strict '>' ascending pass;
    # first occurrence wins on ties, matching torch.argmax).
    m = rows[0]
    pred = jnp.zeros(m.shape, jnp.int32)
    for c in range(1, C):
        gt_c = rows[c] > m
        pred = jnp.where(gt_c, jnp.int32(c), pred)
        m = jnp.where(gt_c, rows[c], m)

    ssum = jnp.exp(rows[0] - m)
    for c in range(1, C):
        ssum = ssum + jnp.exp(rows[c] - m)

    # Target-class logit gather: 2-level select tree for the common C == 4.
    if C == 4:
        lo = jnp.where(tgt == 0, rows[0], rows[1])
        hi = jnp.where(tgt == 2, rows[2], rows[3])
        take = jnp.where(tgt < 2, lo, hi)
    else:
        take = jnp.where(tgt == 0, rows[0], 0.0)
        for c in range(1, C):
            take = jnp.where(tgt == c, rows[c], take)

    lse = m + jnp.log(ssum)
    acc_loss[...] += (lse - take) * msk                  # padded rows -> 0
    # pred is always >= 0, tgt == -1 on padded rows, so no extra mask needed.
    acc_corr[...] += jnp.where(pred == tgt, 1.0, 0.0)

    # Finalize only on the last row step: one cross-lane reduce per (layer,
    # shard) and a single unmasked lane-dense (8, 128) store.
    @pl.when(s == pl.num_programs(2) - 1)
    def _():
        loss_s = jnp.sum(acc_loss[...])
        corr_s = jnp.sum(acc_corr[...])
        sub = lax.broadcasted_iota(jnp.int32, (8, 128), 0)
        out_ref[...] = jnp.where(sub == 0, loss_s,
                                 jnp.where(sub == 1, corr_s, 0.0))


@functools.partial(jax.jit, static_argnames=("tile_rows", "row_shards"))
def _rloss_device(logits, targets, *, tile_rows=512, row_shards=1):
    """logits: (L, M, C) native dtype; targets: (M,) int32 with -1 = padded row.

    Returns per-layer (loss_sum, num_correct) as f32 arrays of shape (L,),
    computed in a single fused pallas_call (all layers, no host syncs).
    """
    L, M, C = logits.shape
    g = max(1, int(row_shards))

    # Minimal padded sublane-row count (multiple of 8), then pick the number of
    # row steps S for the requested max tile and re-derive tr so padding waste
    # is at most ~8 sublane rows per (step, shard) instead of a full block.
    R0 = _round_up(pl.cdiv(M, 128), 8)
    tr_max = _round_up(max(8, min(int(tile_rows), R0)), 8)
    S = pl.cdiv(R0, tr_max * g)
    tr = _round_up(pl.cdiv(R0, S * g), 8)
    R = S * g * tr
    Mp = R * 128
    pad = Mp - M

    # TODO(synk): this transpose+pad is one extra HBM copy of the dominant
    # tensor; have RHead emit class-major (L, C, M) to remove it entirely.
    x = jnp.swapaxes(logits, 1, 2)                        # (L, C, M)
    tgt = targets.astype(jnp.int32)
    if pad:
        x = jnp.pad(x, ((0, 0), (0, 0), (0, pad)))        # zero logits: finite lse
        tgt = jnp.pad(tgt, (0, pad), constant_values=-1)  # sentinel -> masked
    x = x.reshape(L, C, R, 128)                           # lane-dense rows
    tgt = tgt.reshape(R, 128)

    # VMEM budget: raise the scoped limit only if the chosen tile needs it
    # (v5e's default is 16 MiB); default tr=512 needs ~3 MiB.
    vmem_need = (2 * C * tr * 128 * x.dtype.itemsize      # logits, double-buffered
                 + 2 * tr * 128 * 4                       # tgt, double-buffered
                 + 2 * tr * 128 * 4                       # two f32 accumulators
                 + 4 * 8 * 128 * 4)                       # output tile
    cp = dict(dimension_semantics=("parallel", "parallel", "arbitrary"))
    if vmem_need > 16 * 1024 * 1024:
        cp["vmem_limit_bytes"] = min(int(vmem_need * 3 // 2), 100 * 1024 * 1024)

    out = pl.pallas_call(
        _rloss_kernel,
        out_shape=jax.ShapeDtypeStruct((L, g, 8, 128), jnp.float32),
        grid_spec=pltpu.PrefetchScalarGridSpec(
            num_scalar_prefetch=0,
            grid=(L, g, S),
            in_specs=[
                pl.BlockSpec((None, C, tr, 128),
                             lambda l, gg, s: (l, 0, gg * S + s, 0)),
                # TODO(synk): for large L, reorder the grid to put L innermost
                # so this block stays resident instead of re-streaming per layer.
                pl.BlockSpec((tr, 128), lambda l, gg, s: (gg * S + s, 0)),
            ],
            out_specs=pl.BlockSpec((None, None, 8, 128),
                                   lambda l, gg, s: (l, gg, 0, 0)),
            scratch_shapes=[pltpu.VMEM((tr, 128), jnp.float32)] * 2,
        ),
        compiler_params=pltpu.CompilerParams(**cp),
    )(x, tgt)

    out = out.sum(axis=1)                 # reduce row-shard partials -> (L,8,128)
    return out[:, 0, 0], out[:, 1, 0]


def _build_targets(N, brick_padding_list, gt_rotation_state):
    """Dense per-row targets with -1 sentinel for padded rows (device-side,
    no host sync on the ground-truth tensors)."""
    B = len(brick_padding_list)
    tgt = jnp.full((B, N), -1, jnp.int32)
    for b, pad_len in enumerate(brick_padding_list):
        valid = int(N - pad_len)
        t = jnp.asarray(gt_rotation_state[b], jnp.int32).reshape(-1)
        tgt = tgt.at[b, :valid].set(t)
    return tgt.reshape(-1)


def rloss_forward(output, target, brick_padding_list, weight=1.0,
                  tile_rows=512, row_shards=None):
    """Equivalent of RLoss.forward (handles both 3-D and 4-D RHead).

    Fully asynchronous: r_loss and r_acc are returned as device scalars
    (no blocking device->host copy inside the step).
    """
    r_out = output["RHead"]
    gts = target["gt_rotation_state"]
    if r_out.ndim == 3:
        r_out = r_out[None]
    L, B, N, C = r_out.shape
    M = B * N

    targets = _build_targets(N, brick_padding_list, gts)
    total_valid = sum(int(N - p) for p in brick_padding_list)  # layer-invariant

    if row_shards is None:
        # v7x has two TensorCores: keep the parallel grid extent >= 2 when
        # there is only one layer; on single-TC v5e/v6e stay at 1 shard.
        row_shards = 2 if (L == 1 and M >= 2 * int(tile_rows) * 128) else 1

    logits = r_out.reshape(L, M, C)       # keep native dtype; cast in-kernel

    loss_sums, correct = _rloss_device(
        logits, targets, tile_rows=int(tile_rows), row_shards=int(row_shards))

    # CrossEntropyLoss(mean) per layer, summed over layers (device scalar).
    r_loss = jnp.sum(loss_sums) * (weight / total_valid)

    # Per-layer round(acc, 2) like the torch module, computed on device.
    # TODO(synk): jnp.round (half-to-even, f32) may differ from Python round
    # at exact .005 boundaries; acceptable for a logged accuracy metric.
    acc_layers = jnp.round(correct * (10000.0 / total_valid)) / 100.0
    r_acc = jnp.sum(acc_layers) / L

    return r_loss, {"r_loss": r_loss, "r_acc": r_acc}


def _reference(output, target, brick_padding_list, weight=1.0):
    """Pure-JAX reference for a correctness sanity check."""
    r_out = output["RHead"]
    gts = target["gt_rotation_state"]

    def one_layer(x):
        rows, tgts = [], []
        for b, pad_len in enumerate(brick_padding_list):
            valid = x.shape[1] - pad_len
            rows.append(x[b, :valid])
            tgts.append(jnp.asarray(gts[b], jnp.int32).reshape(-1))
        logits = jnp.concatenate(rows).astype(jnp.float32)
        t = jnp.concatenate(tgts)
        logp = jax.nn.log_softmax(logits, axis=-1)
        loss = -jnp.mean(jnp.take_along_axis(logp, t[:, None], axis=1)) * weight
        pred = jnp.argmax(logits, axis=1)
        acc = round(float(jnp.sum(pred == t)) / t.shape[0] * 100.0, 2)
        return float(loss), acc

    if r_out.ndim == 4:
        L = r_out.shape[0]
        tot_l, tot_a = 0.0, 0.0
        for l in range(L):
            ll, aa = one_layer(r_out[l])
            tot_l += ll
            tot_a += aa
        return tot_l, tot_a / L
    return one_layer(r_out)


if __name__ == "__main__":
    key = jax.random.PRNGKey(0)
    L, B, N, C = 2, 2, 8, 4          # layers, batch, max_brick_num, rotation classes
    weight = 1.0
    brick_padding_list = [3, 1]      # per-batch number of padded bricks (at the end)

    k1, k2 = jax.random.split(key)
    r_out = jax.random.normal(k1, (L, B, N, C), dtype=jnp.float32)

    # Per-batch ground-truth rotation states, shape (valid_i, 1) like the module expects.
    gt_rotation_state = []
    for b, pad_len in enumerate(brick_padding_list):
        valid = N - pad_len
        kt = jax.random.fold_in(k2, b)
        t = jax.random.randint(kt, (valid, 1), 0, C, dtype=jnp.int32)
        gt_rotation_state.append(t)

    output = {"RHead": r_out}
    target = {"gt_rotation_state": gt_rotation_state}

    r_loss, info = rloss_forward(output, target, brick_padding_list, weight)
    jax.block_until_ready(r_loss)

    ref_loss, ref_acc = _reference(output, target, brick_padding_list, weight)
    assert abs(float(r_loss) - ref_loss) < 1e-4, (float(r_loss), ref_loss)
    assert abs(float(info["r_acc"]) - ref_acc) < 1e-3, (float(info["r_acc"]), ref_acc)

    print("KERNEL_OK")
</pallas_src>

<mosaic_0001>
module attributes {stable_mosaic.version = 11 : i64} {
  func.func @_rloss_kernel(%arg0: i32, %arg1: i32, %arg2: i32, %arg3: memref<1x4x8x128xf32, #tpu.memory_space<vmem>>, %arg4: memref<8x128xi32, #tpu.memory_space<vmem>>, %arg5: memref<1x1x8x128xf32, #tpu.memory_space<vmem>>, %arg6: memref<8x128xf32, #tpu.memory_space<vmem>>, %arg7: memref<8x128xf32, #tpu.memory_space<vmem>>) attributes {dimension_semantics = [#tpu.dimension_semantics<parallel>, #tpu.dimension_semantics<parallel>, #tpu.dimension_semantics<arbitrary>], iteration_bounds = array<i64: 2, 1, 1>, scalar_prefetch = 0 : i64, scratch_operands = 2 : i64, tpu.core_type = #tpu.core_type<tc>, window_params = [{transform_indices = @transform_0, window_bounds = array<i64: 1, 4, 8, 128>}, {transform_indices = @transform_1, window_bounds = array<i64: 8, 128>}, {transform_indices = @transform_2, window_bounds = array<i64: 1, 1, 8, 128>}]} {
    %c0_i32 = arith.constant 0 : i32
    %0 = arith.cmpi eq, %arg2, %c0_i32 : i32
    %1 = arith.extui %0 : i1 to i32
    %c0_i32_0 = arith.constant 0 : i32
    %2 = arith.cmpi ne, %1, %c0_i32_0 : i32
    scf.if %2 {
      %cst_31 = arith.constant 0.000000e+00 : f32
      %66 = vector.broadcast %cst_31 : f32 to vector<8x128xf32>
      %c0_32 = arith.constant 0 : index
      %c0_33 = arith.constant 0 : index
      %67 = vector.load %arg6[%c0_32, %c0_33] : memref<8x128xf32, #tpu.memory_space<vmem>>, vector<8x128xf32>
      tpu.vector_store %arg6[%c0_32, %c0_33], %66 {strides = array<i32>} : memref<8x128xf32, #tpu.memory_space<vmem>>, vector<8x128xf32>,
      %cst_34 = arith.constant 0.000000e+00 : f32
      %68 = vector.broadcast %cst_34 : f32 to vector<8x128xf32>
      %c0_35 = arith.constant 0 : index
      %c0_36 = arith.constant 0 : index
      %69 = vector.load %arg7[%c0_35, %c0_36] : memref<8x128xf32, #tpu.memory_space<vmem>>, vector<8x128xf32>
      tpu.vector_store %arg7[%c0_35, %c0_36], %68 {strides = array<i32>} : memref<8x128xf32, #tpu.memory_space<vmem>>, vector<8x128xf32>,
    } else {
    }
    %c0 = arith.constant 0 : index
    %c0_1 = arith.constant 0 : index
    %3 = vector.load %arg4[%c0, %c0_1] : memref<8x128xi32, #tpu.memory_space<vmem>>, vector<8x128xi32>
    %c0_i32_2 = arith.constant 0 : i32
    %4 = vector.broadcast %c0_i32_2 : i32 to vector<8x128xi32>
    %5 = arith.cmpi sge, %3, %4 : vector<8x128xi32>
    %6 = arith.extui %5 : vector<8x128xi1> to vector<8x128xi32>
    %7 = arith.sitofp %6 : vector<8x128xi32> to vector<8x128xf32>
    %c0_3 = arith.constant 0 : index
    %c0_4 = arith.constant 0 : index
    %c0_5 = arith.constant 0 : index
    %c0_6 = arith.constant 0 : index
    %8 = vector.load %arg3[%c0_3, %c0_4, %c0_5, %c0_6] : memref<1x4x8x128xf32, #tpu.memory_space<vmem>>, vector<1x1x8x128xf32>
    %9 = vector.shape_cast %8 : vector<1x1x8x128xf32> to vector<8x128xf32>
    %c0_7 = arith.constant 0 : index
    %c1 = arith.constant 1 : index
    %c0_8 = arith.constant 0 : index
    %c0_9 = arith.constant 0 : index
    %10 = vector.load %arg3[%c0_7, %c1, %c0_8, %c0_9] : memref<1x4x8x128xf32, #tpu.memory_space<vmem>>, vector<1x1x8x128xf32>
    %11 = vector.shape_cast %10 : vector<1x1x8x128xf32> to vector<8x128xf32>
    %c0_10 = arith.constant 0 : index
    %c2 = arith.constant 2 : index
    %c0_11 = arith.constant 0 : index
    %c0_12 = arith.constant 0 : index
    %12 = vector.load %arg3[%c0_10, %c2, %c0_11, %c0_12] : memref<1x4x8x128xf32, #tpu.memory_space<vmem>>, vector<1x1x8x128xf32>
    %13 = vector.shape_cast %12 : vector<1x1x8x128xf32> to vector<8x128xf32>
    %c0_13 = arith.constant 0 : index
    %c3 = arith.constant 3 : index
    %c0_14 = arith.constant 0 : index
    %c0_15 = arith.constant 0 : index
    %14 = vector.load %arg3[%c0_13, %c3, %c0_14, %c0_15] : memref<1x4x8x128xf32, #tpu.memory_space<vmem>>, vector<1x1x8x128xf32>
    %15 = vector.shape_cast %14 : vector<1x1x8x128xf32> to vector<8x128xf32>
    %c0_i32_16 = arith.constant 0 : i32
    %16 = vector.broadcast %c0_i32_16 : i32 to vector<8x128xi32>
    %17 = arith.cmpf ogt, %11, %9 : vector<8x128xf32>
    %c1_i32 = arith.constant 1 : i32
    %18 = vector.broadcast %c1_i32 : i32 to vector<8x128xi32>
    %19 = arith.select %17, %18, %16 : vector<8x128xi1>, vector<8x128xi32>
    %20 = arith.select %17, %11, %9 : vector<8x128xi1>, vector<8x128xf32>
    %21 = arith.cmpf ogt, %13, %20 : vector<8x128xf32>
    %c2_i32 = arith.constant 2 : i32
    %22 = vector.broadcast %c2_i32 : i32 to vector<8x128xi32>
    %23 = arith.select %21, %22, %19 : vector<8x128xi1>, vector<8x128xi32>
    %24 = arith.select %21, %13, %20 : vector<8x128xi1>, vector<8x128xf32>
    %25 = arith.cmpf ogt, %15, %24 : vector<8x128xf32>
    %c3_i32 = arith.constant 3 : i32
    %26 = vector.broadcast %c3_i32 : i32 to vector<8x128xi32>
    %27 = arith.select %25, %26, %23 : vector<8x128xi1>, vector<8x128xi32>
    %28 = arith.select %25, %15, %24 : vector<8x128xi1>, vector<8x128xf32>
    %29 = arith.subf %9, %28 : vector<8x128xf32>
    %30 = math.exp %29 : vector<8x128xf32>
    %31 = arith.subf %11, %28 : vector<8x128xf32>
    %32 = math.exp %31 : vector<8x128xf32>
    %33 = arith.addf %30, %32 : vector<8x128xf32>
    %34 = arith.subf %13, %28 : vector<8x128xf32>
    %35 = math.exp %34 : vector<8x128xf32>
    %36 = arith.addf %33, %35 : vector<8x128xf32>
    %37 = arith.subf %15, %28 : vector<8x128xf32>
    %38 = math.exp %37 : vector<8x128xf32>
    %39 = arith.addf %36, %38 : vector<8x128xf32>
    %c0_i32_17 = arith.constant 0 : i32
    %40 = vector.broadcast %c0_i32_17 : i32 to vector<8x128xi32>
    %41 = arith.cmpi eq, %3, %40 : vector<8x128xi32>
    %42 = arith.select %41, %9, %11 : vector<8x128xi1>, vector<8x128xf32>
    %c2_i32_18 = arith.constant 2 : i32
    %43 = vector.broadcast %c2_i32_18 : i32 to vector<8x128xi32>
    %44 = arith.cmpi eq, %3, %43 : vector<8x128xi32>
    %45 = arith.select %44, %13, %15 : vector<8x128xi1>, vector<8x128xf32>
    %c2_i32_19 = arith.constant 2 : i32
    %46 = vector.broadcast %c2_i32_19 : i32 to vector<8x128xi32>
    %47 = arith.cmpi slt, %3, %46 : vector<8x128xi32>
    %48 = arith.select %47, %42, %45 : vector<8x128xi1>, vector<8x128xf32>
    %49 = math.log %39 : vector<8x128xf32>
    %50 = arith.addf %28, %49 : vector<8x128xf32>
    %c0_20 = arith.constant 0 : index
    %c0_21 = arith.constant 0 : index
    %51 = vector.load %arg6[%c0_20, %c0_21] : memref<8x128xf32, #tpu.memory_space<vmem>>, vector<8x128xf32>
    %52 = arith.subf %50, %48 : vector<8x128xf32>
    %53 = arith.mulf %52, %7 : vector<8x128xf32>
    %54 = arith.addf %51, %53 : vector<8x128xf32>
    %c0_22 = arith.constant 0 : index
    %c0_23 = arith.constant 0 : index
    %55 = vector.load %arg6[%c0_22, %c0_23] : memref<8x128xf32, #tpu.memory_space<vmem>>, vector<8x128xf32>
    tpu.vector_store %arg6[%c0_22, %c0_23], %54 {strides = array<i32>} : memref<8x128xf32, #tpu.memory_space<vmem>>, vector<8x128xf32>,
    %c0_24 = arith.constant 0 : index
    %c0_25 = arith.constant 0 : index
    %56 = vector.load %arg7[%c0_24, %c0_25] : memref<8x128xf32, #tpu.memory_space<vmem>>, vector<8x128xf32>
    %57 = arith.cmpi eq, %27, %3 : vector<8x128xi32>
    %cst = arith.constant 1.000000e+00 : f32
    %cst_26 = arith.constant 0.000000e+00 : f32
    %58 = vector.broadcast %cst : f32 to vector<8x128xf32>
    %59 = vector.broadcast %cst_26 : f32 to vector<8x128xf32>
    %60 = arith.select %57, %58, %59 : vector<8x128xi1>, vector<8x128xf32>
    %61 = arith.addf %56, %60 : vector<8x128xf32>
    %c0_27 = arith.constant 0 : index
    %c0_28 = arith.constant 0 : index
    %62 = vector.load %arg7[%c0_27, %c0_28] : memref<8x128xf32, #tpu.memory_space<vmem>>, vector<8x128xf32>
    tpu.vector_store %arg7[%c0_27, %c0_28], %61 {strides = array<i32>} : memref<8x128xf32, #tpu.memory_space<vmem>>, vector<8x128xf32>,
    %c0_i32_29 = arith.constant 0 : i32
    %63 = arith.cmpi eq, %arg2, %c0_i32_29 : i32
    %64 = arith.extui %63 : i1 to i32
    %c0_i32_30 = arith.constant 0 : i32
    %65 = arith.cmpi ne, %64, %c0_i32_30 : i32
    scf.if %65 {
      %c0_31 = arith.constant 0 : index
      %c0_32 = arith.constant 0 : index
      %66 = vector.load %arg6[%c0_31, %c0_32] : memref<8x128xf32, #tpu.memory_space<vmem>>, vector<8x128xf32>
      %67 = vector.shape_cast %66 : vector<8x128xf32> to vector<1x8x128xf32>
      %cst_33 = arith.constant dense<0.000000e+00> : vector<1xf32>
      %68 = vector.multi_reduction <add>, %67, %cst_33 [1, 2] : vector<1x8x128xf32> to vector<1xf32>
      %69 = vector.shape_cast %68 : vector<1xf32> to vector<1x1x1xf32>
      %70 = vector.extract %69[0, 0, 0] : f32 from vector<1x1x1xf32>
      %c0_34 = arith.constant 0 : index
      %c0_35 = arith.constant 0 : index
      %71 = vector.load %arg7[%c0_34, %c0_35] : memref<8x128xf32, #tpu.memory_space<vmem>>, vector<8x128xf32>
      %72 = vector.shape_cast %71 : vector<8x128xf32> to vector<1x8x128xf32>
      %cst_36 = arith.constant dense<0.000000e+00> : vector<1xf32>
      %73 = vector.multi_reduction <add>, %72, %cst_36 [1, 2] : vector<1x8x128xf32> to vector<1xf32>
      %74 = vector.shape_cast %73 : vector<1xf32> to vector<1x1x1xf32>
      %75 = vector.extract %74[0, 0, 0] : f32 from vector<1x1x1xf32>
      %76 = tpu.iota {dimensions = array<i32: 0>} : vector<8x128xi32>
      %c0_i32_37 = arith.constant 0 : i32
      %77 = vector.broadcast %c0_i32_37 : i32 to vector<8x128xi32>
      %78 = arith.cmpi eq, %76, %77 : vector<8x128xi32>
      %c1_i32_38 = arith.constant 1 : i32
      %79 = vector.broadcast %c1_i32_38 : i32 to vector<8x128xi32>
      %80 = arith.cmpi eq, %76, %79 : vector<8x128xi32>
      %cst_39 = arith.constant 0.000000e+00 : f32
      %81 = vector.broadcast %75 : f32 to vector<8x128xf32>
      %82 = vector.broadcast %cst_39 : f32 to vector<8x128xf32>
      %83 = arith.select %80, %81, %82 : vector<8x128xi1>, vector<8x128xf32>
      %84 = vector.broadcast %70 : f32 to vector<8x128xf32>
      %85 = arith.select %78, %84, %83 : vector<8x128xi1>, vector<8x128xf32>
      %c0_40 = arith.constant 0 : index
      %c0_41 = arith.constant 0 : index
      %c0_42 = arith.constant 0 : index
      %c0_43 = arith.constant 0 : index
      %86 = vector.load %arg5[%c0_40, %c0_41, %c0_42, %c0_43] : memref<1x1x8x128xf32, #tpu.memory_space<vmem>>, vector<1x1x8x128xf32>
      %87 = vector.shape_cast %86 : vector<1x1x8x128xf32> to vector<8x128xf32>
      %88 = vector.shape_cast %85 : vector<8x128xf32> to vector<1x1x8x128xf32>
      tpu.vector_store %arg5[%c0_40, %c0_41, %c0_42, %c0_43], %88 {strides = array<i32>} : memref<1x1x8x128xf32, #tpu.memory_space<vmem>>, vector<1x1x8x128xf32>,
    } else {
    }
    return
  }
  func.func @transform_0(%arg0: i32, %arg1: i32, %arg2: i32) -> (i32, i32, i32, i32) {
    %c1_i32 = arith.constant 1 : i32
    %0 = arith.muli %arg1, %c1_i32 : i32
    %1 = arith.addi %0, %arg2 : i32
    %c0_i32 = arith.constant 0 : i32
    %c0_i32_0 = arith.constant 0 : i32
    %c0_i32_1 = arith.constant 0 : i32
    return %arg0, %c0_i32, %1, %c0_i32_0 : i32, i32, i32, i32
  }
  func.func @transform_1(%arg0: i32, %arg1: i32, %arg2: i32) -> (i32, i32) {
    %c1_i32 = arith.constant 1 : i32
    %0 = arith.muli %arg1, %c1_i32 : i32
    %1 = arith.addi %0, %arg2 : i32
    %c0_i32 = arith.constant 0 : i32
    %c0_i32_0 = arith.constant 0 : i32
    return %1, %c0_i32 : i32, i32
  }
  func.func @transform_2(%arg0: i32, %arg1: i32, %arg2: i32) -> (i32, i32, i32, i32) {
    %c0_i32 = arith.constant 0 : i32
    %c0_i32_0 = arith.constant 0 : i32
    %c0_i32_1 = arith.constant 0 : i32
    return %arg0, %arg1, %c0_i32, %c0_i32_0 : i32, i32, i32, i32
  }
}

</mosaic_0001>

<bundles_post_ra>
// kernel: _rloss_device.1
= control target key start
LH: loop header
LB: loop body
LE: loop exit
PB: predicated region body
PF: predicated region fallthrough
CT: control target
= control target key end

     0   :  { %s496_s9 = smov 0   ;;  %s498_s10 = smov 0   ;;  %s542_s0 = inlined_call_operand.vmem [shape: f32[2,4,8,128], index: 0, kind: input, shape index: {}]   ;;  %s543_s1 = inlined_call_operand.vmem [shape: s32[8,128], index: 1, kind: input, shape index: {}]   ;;  %s544_s2 = inlined_call_operand.vmem [shape: f32[2,1,8,128], index: 2, kind: output, shape index: {}]  }
   0x1   :  { %s500_s11 = smov 0  }
   0x2 LB: > { %s31_s12 = sadd.s32 1, %s473_s10  ;;  %p404_p0 = scmp.ge.s32.totalorder %s477_s11, 1  ;;  %s477_s11 = sphi %s500_s11, %s12_s11   ;;  %s473_s10 = sphi %s498_s10, %s546_s10   ;;  %s469_s9 = sphi %s496_s9, %s545_s9  }
   0x3   : > { %p33_p1 = scmp.ge.s32.totalorder %s31_s12, 2  ;;  %p155_p2 = scmp.lt.s32.totalorder %s477_s11, 3 }
   0x5   : > { %s548_s12 = smov (%p33_p1, %s31_s12), 0  ;;  %p156_p3 = pnand %p404_p0, %p155_p2 }
   0x6   : > { %p189_p4 = scmp.lt.s32.totalorder (!%p156_p3), %s469_s9, 1  ;;  %v217_v22 = vld [vmem:[%s543_s1] sm:$0xff] (!%p156_p3)  ;;  %v479_v23 = vmov (!%p156_p3), 0   ;;  %v480_v32 = vmov (!%p156_p3), 0.0   ;;  %v294_v52 = vlaneseq (!%p156_p3) }
   0x7   : > { %159 = sbr.rel (%p156_p3) target bundleno = 277 (0x115), region = 28  ;;  %vm252_vm3 = vcmp.eq.s32.totalorder (!%p156_p3), %v217_v22, 0  ;;  %vm254_vm4 = vcmp.eq.s32.totalorder (!%p156_p3), %v217_v22, 2  ;;  %vm256_vm5 = vcmp.lt.s32.totalorder (!%p156_p3), %v217_v22, 2  ;;  %vm218_vm6 = vcmp.ge.s32.totalorder (!%p156_p3), %v217_v22, 0 }
   0x8   : > { %v408_v33 = vsel (!%p156_p3), %vm218_vm6, 1.0, %v480_v32  ;;  %v295_v53 = vshrl.u32 (!%p156_p3), %v294_v52, 7 }
   0xa   : > { %vm297_vm8 = vcmp.eq.s32.totalorder (!%p156_p3), %v295_v53, 1  ;;  %vm296_vm9 = vcmp.eq.s32.totalorder (!%p156_p3), %v295_v53, 0 }
   0xe   : > { %s550_s9 = smov (!%p189_p4, %s469_s9), 1 }
   0xf   : > { %s414_s13 = sshll.u32 %s550_s9, 5  ;;  %s407_s19 = sshll.u32 %s550_s9, 3 }
  0x10   : > { %s196_s16 = scalar_lea.vmem %s542_s0, %s414_s13  ;;  %s210_s24 = scalar_lea.vmem %s544_s2, %s407_s19 }
  0x11   : > { %v221_v0 = vld [vmem:[%s196_s16] sm:$0xff]  ;;  %v409_v1 = vld [vmem:[%s196_s16 + $0x8] sm:$0xff]  ;;  %v410_v2 = vld [vmem:[%s196_s16 + $0x10] sm:$0xff] }
  0x12   : > { %vm228_vm0 = vcmp.gt.f32.partialorder %v409_v1, %v221_v0  ;;  %v411_v3 = vld [vmem:[%s196_s16 + $0x18] sm:$0xff]  ;;  %v253_v25 = vsel %vm252_vm3, %v221_v0, %v409_v1 }
  0x13   : > { %v230_v4 = vsel %vm228_vm0, %v409_v1, %v221_v0  ;;  %v229_v24 = vsel %vm228_vm0, 1, %v479_v23  ;;  %v255_v26 = vsel %vm254_vm4, %v410_v2, %v411_v3 }
  0x14   : > { %vm231_vm1 = vcmp.gt.f32.partialorder %v410_v2, %v230_v4  ;;  %v257_v30 = vsel %vm256_vm5, %v253_v25, %v255_v26 }
  0x15   : > { %v233_v5 = vsel %vm231_vm1, %v410_v2, %v230_v4  ;;  %v232_v29 = vsel %vm231_vm1, 2, %v229_v24 }
  0x16   : > { %vm234_vm2 = vcmp.gt.f32.partialorder %v411_v3, %v233_v5 }
  0x17   : > { %v236_v6 = vsel %vm234_vm2, %v411_v3, %v233_v5  ;;  %v235_v34 = vsel %vm234_vm2, 3, %v232_v29 }
  0x18   : > { %v237_v7 = vsub.f32 %v221_v0, %v236_v6  ;;  %v240_v8 = vsub.f32 %v409_v1, %v236_v6  ;;  %v244_v9 = vsub.f32 %v410_v2, %v236_v6  ;;  %v248_v10 = vsub.f32 %v411_v3, %v236_v6 }
  0x19   : > { %vm267_vm7 = vcmp.eq.s32.totalorder %v235_v34, %v217_v22 }
  0x1a   : > { %v238_v11 = vmul.f32 1.442695, %v237_v7  ;;  %v241_v12 = vmul.f32 1.442695, %v240_v8  ;;  %v245_v13 = vmul.f32 1.442695, %v244_v9 }
  0x1b   : > { %v249_v14 = vmul.f32 1.442695, %v248_v10  ;;  %v268_v37 = vsel %vm267_vm7, 1.0, %v480_v32 }
  0x1c   : > { %445 = vpow2.f32 %v238_v11 }
  0x1d   : > { %447 = vpow2.f32 %v241_v12 }
  0x1e   : > { %449 = vpow2.f32 %v245_v13 }
  0x1f   : > { %451 = vpow2.f32 %v249_v14 }
  0x26   : > { %v446_v15 = vpop.eup %445 }
  0x27   : > { %v448_v16 = vpop.eup %447 }
  0x28   : > { %v450_v17 = vpop.eup %449  ;;  %v243_v18 = vadd.f32 %v448_v16, %v446_v15 }
  0x29   : > { %v452_v19 = vpop.eup %451 }
  0x2a   : > { %v247_v20 = vadd.f32 %v450_v17, %v243_v18 }
  0x2c   : > { %v251_v21 = vadd.f32 %v452_v19, %v247_v20 }
  0x2e   : > { %453 = vlog2.f32 %v251_v21 }
  0x38   : > { %v454_v27 = vpop.eup %453 }
  0x39   : > { %v259_v28 = vmul.f32 0.6931472, %v454_v27 }
  0x3b   : > { %v260_v31 = vadd.f32 %v259_v28, %v236_v6 }
  0x3d   : > { %v262_v35 = vsub.f32 %v260_v31, %v257_v30 }
  0x3f   : > { %v263_v36 = vmul.f32 %v408_v33, %v262_v35 }
  0x41   : > { %275 = vadd.xlane.f32.xlu0 %v263_v36 }
  0x45   : > { %285 = vadd.xlane.f32.xlu0 %v268_v37 }
  0xce   : > { %v276_v38 = vpop.xlane.xlu0 %275 }
  0xcf   : > { %v277_v39 = vrot.slane %v276_v38, 4 }
  0xd1   : > { %v278_v40 = vadd.f32 %v277_v39, %v276_v38 }
  0xd2   : > { %v286_v41 = vpop.xlane.xlu0 %285 }
  0xd3   : > { %v279_v42 = vrot.slane %v278_v40, 2  ;;  %v287_v43 = vrot.slane %v286_v41, 4 }
  0xd5   : > { %v288_v44 = vadd.f32 %v287_v43, %v286_v41  ;;  %v280_v45 = vadd.f32 %v279_v42, %v278_v40 }
  0xd7   : > { %v289_v46 = vrot.slane %v288_v44, 2  ;;  %v281_v47 = vrot.slane %v280_v45, 1 }
  0xd9   : > { %v290_v48 = vadd.f32 %v289_v46, %v288_v44  ;;  %v282_v49 = vadd.f32 %v281_v47, %v280_v45 }
  0xdb   : > { %415 = vpush %v282_v49  ;;  %v291_v50 = vrot.slane %v290_v48, 1 }
  0xdd   : > { %v292_v51 = vadd.f32 %v291_v50, %v290_v48 }
  0xdf   : > { %417 = vpush %v292_v51 }
 0x10c   : > { %s416_s20 = spop %415 }
 0x10d   : > { %v300_v55 = vstv %s416_s20 }
 0x110   : > { %s418_s21 = spop %417 }
 0x111   : > { %v298_v54 = vstv %s418_s21 }
 0x112   : > { %v299_v56 = vsel %vm297_vm8, %v298_v54, 0.0 }
 0x113   : > { %v301_v57 = vsel %vm296_vm9, %v300_v55, %v299_v56 }
 0x114   : > { %302 = vst [vmem:[%s210_s24] sm:$0xff] %v301_v57 }
 0x115 PF: > { %s12_s11 = sadd.s32 1, %s477_s11   ;;  %s545_s9 = smov %s473_s10 }
 0x116   : > { %p9_p5 = scmp.ge.s32.totalorder %s12_s11, 4   ;;  %s546_s10 = smov %s548_s12 }
 0x118   :  { %11 = sbr.rel (!%p9_p5) target bundleno = 2 (0x2), region = 72 }

</bundles_post_ra>
